<compile_context>
chip_gen: v6e
topology: v6e:2x2x1
jax: 0.10.0
libtpu: 0.0.40
codegen_flags: <defaults>
</compile_context>

<pallas_src>
import jax
import jax.numpy as jnp
from jax.experimental import pallas as pl
from jax.experimental.pallas import tpu as pltpu


def _focus_conv_kernel(x_ref, w_ref, b_ref, o_ref):
    """Fused 1x1-conv (channels-major matmul) + folded-BN bias + SiLU.

    x_ref: (4*C1, TILE_P) bf16   -- pixels in lanes
    w_ref: (C2, 4*C1)     bf16   -- BN scale already folded in
    b_ref: (C2, 1)        f32    -- folded BN bias
    o_ref: (C2, TILE_P)   bf16 (default) -- lane-dense store
    """
    z = jnp.dot(w_ref[...], x_ref[...], preferred_element_type=jnp.float32)
    z = z + b_ref[...]                                   # broadcast along lanes
    # SiLU = z * sigmoid(z) = z / (1 + exp(-z)); approx reciprocal keeps it to two
    # EUP pushes (exp + vrcp) instead of exp + full divide.
    sig = pl.reciprocal(1.0 + jnp.exp(-z), approx=True)
    o_ref[...] = (z * sig).astype(o_ref.dtype)


def _pick_tile_p(P, tile_p_max):
    """Pixel-tile size: full P when small; else a 128-multiple divisor of P if one
    exists (lane-dense unmasked stores on every step); else a 128-multiple with a
    masked ragged last tile."""
    if P <= tile_p_max:
        return P
    t_cap = max((tile_p_max // 128) * 128, 128)
    t = t_cap
    while t >= 128:
        if P % t == 0:
            return t
        t -= 128
    return t_cap  # ragged final tile; Pallas masks the tail writes


def focus_forward(x, conv_weight, bn_gamma, bn_beta, bn_mean, bn_var,
                  eps=1e-5, tile_p_max=32768, out_dtype=jnp.bfloat16):
    """x: (B, C1, H, W) f32.  conv_weight: (C2, 4*C1, 1, 1).  Returns NCHW (B, C2, H/2, W/2)."""
    B, C1, H, W = x.shape
    C2 = conv_weight.shape[0]
    H2, W2 = H // 2, W // 2
    K = 4 * C1
    P = H2 * W2

    # --- space-to-depth (torch.cat order), kept channels-major, cast to bf16.
    # No transposes: (B, 4*C1, H2, W2) -> (B, 4*C1, P) is a free reshape and the
    # kernel output reshapes straight back to NCHW.
    x_bf = x.astype(jnp.bfloat16)
    s2d = jnp.concatenate(
        (x_bf[..., ::2, ::2], x_bf[..., 1::2, ::2],
         x_bf[..., ::2, 1::2], x_bf[..., 1::2, 1::2]),
        axis=1,
    )                                          # (B, 4*C1, H2, W2)
    xt = s2d.reshape(B, K, P)                  # pixels are the lane (last) dim

    # --- fold BatchNorm (inference) into the 1x1 conv weight / a per-channel bias.
    scale = bn_gamma / jnp.sqrt(bn_var + eps)                       # (C2,)
    w2d = conv_weight[:, :, 0, 0].astype(jnp.float32)               # (C2, 4*C1)
    wt = (w2d * scale[:, None]).astype(jnp.bfloat16)                # (C2, 4*C1) bf16
    bias = (bn_beta - bn_mean * scale).astype(jnp.float32).reshape(C2, 1)

    # --- pixel tiling.
    tile_p = _pick_tile_p(P, tile_p_max)
    n_tiles = pl.cdiv(P, tile_p)
    # Keep >= 2 grid programs when the problem allows it (megacore balance on v7x).
    if B * n_tiles < 2 and tile_p % 256 == 0:
        tile_p //= 2
        n_tiles = pl.cdiv(P, tile_p)
    grid = (B, n_tiles)

    out_itemsize = jnp.dtype(out_dtype).itemsize
    cost = pl.CostEstimate(
        flops=2 * B * P * K * C2,
        transcendentals=2 * B * P * C2,          # exp + approx reciprocal
        bytes_accessed=(B * K * P * 2            # bf16 activation read
                        + C2 * K * 2 + C2 * 4    # folded weight + bias
                        + B * C2 * P * out_itemsize),  # output write
    )

    out = pl.pallas_call(
        _focus_conv_kernel,
        out_shape=jax.ShapeDtypeStruct((B, C2, P), out_dtype),
        grid_spec=pltpu.PrefetchScalarGridSpec(
            num_scalar_prefetch=0,
            grid=grid,
            in_specs=[
                pl.BlockSpec((None, K, tile_p), lambda b, i: (b, 0, i)),  # activations
                pl.BlockSpec((C2, K), lambda b, i: (0, 0)),               # folded weight
                pl.BlockSpec((C2, 1), lambda b, i: (0, 0)),               # folded bias
            ],
            out_specs=pl.BlockSpec((None, C2, tile_p), lambda b, i: (b, 0, i)),
        ),
        compiler_params=pltpu.CompilerParams(
            dimension_semantics=("parallel", "parallel"),
        ),
        cost_estimate=cost,
    )(xt, wt, bias)

    return out.reshape(B, C2, H2, W2)          # free reshape: already NCHW-ordered


def _focus_reference(x, conv_weight, bn_gamma, bn_beta, bn_mean, bn_var, eps=1e-5):
    """Pure-JAX f32 reference matching the PyTorch module."""
    s2d = jnp.concatenate(
        (x[..., ::2, ::2], x[..., 1::2, ::2], x[..., ::2, 1::2], x[..., 1::2, 1::2]),
        axis=1,
    )
    z = jax.lax.conv_general_dilated(
        s2d, conv_weight, window_strides=(1, 1), padding="VALID",
        dimension_numbers=("NCHW", "OIHW", "NCHW"))
    scale = bn_gamma / jnp.sqrt(bn_var + eps)
    z = z * scale[None, :, None, None] + (bn_beta - bn_mean * scale)[None, :, None, None]
    return z * jax.nn.sigmoid(z)


if __name__ == "__main__":
    key = jax.random.PRNGKey(0)
    k_x, k_w, k_g, k_b, k_m, k_v = jax.random.split(key, 6)

    B, C1, H, W = 2, 4, 16, 16
    C2 = 8

    x = jax.random.normal(k_x, (B, C1, H, W), dtype=jnp.float32)

    # Conv2d(4*c1 -> c2, k=1, bias=False) weight: (c2, 4*c1, 1, 1)
    conv_weight = jax.random.normal(k_w, (C2, 4 * C1, 1, 1), dtype=jnp.float32) * 0.1
    # BatchNorm2d(c2) params / running stats (inference-mode forward)
    bn_gamma = 1.0 + 0.1 * jax.random.normal(k_g, (C2,), dtype=jnp.float32)
    bn_beta = 0.1 * jax.random.normal(k_b, (C2,), dtype=jnp.float32)
    bn_mean = 0.1 * jax.random.normal(k_m, (C2,), dtype=jnp.float32)
    bn_var = jnp.abs(1.0 + 0.1 * jax.random.normal(k_v, (C2,), dtype=jnp.float32))

    focus_jit = jax.jit(focus_forward)
    y = focus_jit(x, conv_weight, bn_gamma, bn_beta, bn_mean, bn_var)
    y = jax.block_until_ready(y)
    assert y.shape == (B, C2, H // 2, W // 2), y.shape

    # Correctness check against the pure-JAX f32 reference (bf16 streaming/output
    # plus approx reciprocal => loose tolerance).
    y_ref = _focus_reference(x, conv_weight, bn_gamma, bn_beta, bn_mean, bn_var)
    max_err = float(jnp.max(jnp.abs(y.astype(jnp.float32) - y_ref)))
    assert max_err < 5e-2, f"max abs error {max_err}"

    print("KERNEL_OK")
</pallas_src>

<mosaic_0001>
module attributes {stable_mosaic.version = 11 : i64} {
  func.func @_focus_conv_kernel(%arg0: i32, %arg1: i32, %arg2: memref<1x16x64xbf16, #tpu.memory_space<vmem>>, %arg3: memref<8x16xbf16, #tpu.memory_space<vmem>>, %arg4: memref<8x1xf32, #tpu.memory_space<vmem>>, %arg5: memref<1x8x64xbf16, #tpu.memory_space<vmem>>) attributes {dimension_semantics = [#tpu.dimension_semantics<parallel>, #tpu.dimension_semantics<parallel>], iteration_bounds = array<i64: 2, 1>, scalar_prefetch = 0 : i64, scratch_operands = 0 : i64, tpu.core_type = #tpu.core_type<tc>, window_params = [{transform_indices = @transform_0, window_bounds = array<i64: 1, 16, 64>}, {pipeline_mode = #tpu.pipeline_mode<synchronous>, transform_indices = @transform_1, window_bounds = array<i64: 8, 16>}, {pipeline_mode = #tpu.pipeline_mode<synchronous>, transform_indices = @transform_2, window_bounds = array<i64: 8, 1>}, {transform_indices = @transform_3, window_bounds = array<i64: 1, 8, 64>}]} {
    %c0 = arith.constant 0 : index
    %c0_0 = arith.constant 0 : index
    %0 = vector.load %arg3[%c0, %c0_0] : memref<8x16xbf16, #tpu.memory_space<vmem>>, vector<8x16xbf16>
    %c0_1 = arith.constant 0 : index
    %c0_2 = arith.constant 0 : index
    %c0_3 = arith.constant 0 : index
    %1 = vector.load %arg2[%c0_1, %c0_2, %c0_3] : memref<1x16x64xbf16, #tpu.memory_space<vmem>>, vector<1x16x64xbf16>
    %2 = vector.shape_cast %1 : vector<1x16x64xbf16> to vector<16x64xbf16>
    %cst = arith.constant dense<0.000000e+00> : vector<8x64xf32>
    %3 = tpu.matmul %0, %2, %cst {dimension_numbers = #tpu.dot_dimension_numbers<[1], [0], [0], [1], [0, 0, 1, 1], [], []>} : vector<8x16xbf16>, vector<16x64xbf16>, vector<8x64xf32> -> vector<8x64xf32>
    %c0_4 = arith.constant 0 : index
    %c0_5 = arith.constant 0 : index
    %4 = vector.load %arg4[%c0_4, %c0_5] : memref<8x1xf32, #tpu.memory_space<vmem>>, vector<8x1xf32>
    %5 = vector.broadcast %4 : vector<8x1xf32> to vector<8x64xf32>
    %6 = arith.addf %3, %5 : vector<8x64xf32>
    %cst_6 = arith.constant 0.000000e+00 : f32
    %7 = vector.broadcast %cst_6 : f32 to vector<8x64xf32>
    %8 = arith.subf %7, %6 : vector<8x64xf32>
    %9 = math.exp %8 : vector<8x64xf32>
    %cst_7 = arith.constant 1.000000e+00 : f32
    %10 = vector.broadcast %cst_7 : f32 to vector<8x64xf32>
    %11 = arith.addf %10, %9 : vector<8x64xf32>
    %12 = tpu.reciprocal %11 {approx = true} : vector<8x64xf32> -> vector<8x64xf32>
    %13 = arith.mulf %6, %12 : vector<8x64xf32>
    %14 = arith.truncf %13 : vector<8x64xf32> to vector<8x64xbf16>
    %c0_8 = arith.constant 0 : index
    %c0_9 = arith.constant 0 : index
    %c0_10 = arith.constant 0 : index
    %15 = vector.load %arg5[%c0_8, %c0_9, %c0_10] : memref<1x8x64xbf16, #tpu.memory_space<vmem>>, vector<1x8x64xbf16>
    %16 = vector.shape_cast %15 : vector<1x8x64xbf16> to vector<8x64xbf16>
    %17 = vector.shape_cast %14 : vector<8x64xbf16> to vector<1x8x64xbf16>
    tpu.vector_store %arg5[%c0_8, %c0_9, %c0_10], %17 {strides = array<i32>} : memref<1x8x64xbf16, #tpu.memory_space<vmem>>, vector<1x8x64xbf16>,
    return
  }
  func.func @transform_0(%arg0: i32, %arg1: i32) -> (i32, i32, i32) {
    %c0_i32 = arith.constant 0 : i32
    %c0_i32_0 = arith.constant 0 : i32
    return %arg0, %c0_i32, %arg1 : i32, i32, i32
  }
  func.func @transform_1(%arg0: i32, %arg1: i32) -> (i32, i32) {
    %c0_i32 = arith.constant 0 : i32
    %c0_i32_0 = arith.constant 0 : i32
    %c0_i32_1 = arith.constant 0 : i32
    return %c0_i32, %c0_i32_0 : i32, i32
  }
  func.func @transform_2(%arg0: i32, %arg1: i32) -> (i32, i32) {
    %c0_i32 = arith.constant 0 : i32
    %c0_i32_0 = arith.constant 0 : i32
    %c0_i32_1 = arith.constant 0 : i32
    return %c0_i32, %c0_i32_0 : i32, i32
  }
  func.func @transform_3(%arg0: i32, %arg1: i32) -> (i32, i32, i32) {
    %c0_i32 = arith.constant 0 : i32
    %c0_i32_0 = arith.constant 0 : i32
    return %arg0, %c0_i32, %arg1 : i32, i32, i32
  }
}

</mosaic_0001>

<bundles_post_ra>
// kernel: focus_forward.1
= control target key start
LH: loop header
LB: loop body
LE: loop exit
PB: predicated region body
PF: predicated region fallthrough
CT: control target
= control target key end

     0   :  { %s447_s12 = smov 0   ;;  %s449_s13 = smov 0   ;;  %s486_s0 = inlined_call_operand.vmem [shape: bf16[2,16,64], index: 0, kind: input, shape index: {}]   ;;  %s487_s1 = inlined_call_operand.vmem [shape: bf16[8,16], index: 1, kind: input, shape index: {}]   ;;  %s488_s2 = inlined_call_operand.vmem [shape: f32[8,1], index: 2, kind: input, shape index: {}]   ;;  %s489_s3 = inlined_call_operand.vmem [shape: bf16[2,8,64], index: 3, kind: output, shape index: {}]  }
   0x1   :  { %s451_s14 = smov 0  }
   0x2 LB: > { %s25_s15 = sadd.s32 1, %s418_s13  ;;  %p350_p0 = scmp.ge.s32.totalorder %s422_s14, 1  ;;  %s422_s14 = sphi %s451_s14, %s13_s14   ;;  %s418_s13 = sphi %s449_s13, %s491_s13   ;;  %s414_s12 = sphi %s447_s12, %s490_s12  }
   0x3   : > { %p27_p1 = scmp.ge.s32.totalorder %s25_s15, 2  ;;  %p156_p2 = scmp.lt.s32.totalorder %s422_s14, 3 }
   0x5   : > { %s493_s15 = smov (%p27_p1, %s25_s15), 0  ;;  %p157_p3 = pnand %p350_p0, %p156_p2 }
   0x6   : > { %p185_p4 = scmp.lt.s32.totalorder (!%p157_p3), %s414_s12, 1 }
   0x7   : > { %160 = sbr.rel (%p157_p3) target bundleno = 253 (0xfd), region = 32 }
   0xc   : > { %v424_v0 = vmov 0.0   ;;  %vm425_vm0 = vmmov 0   ;;  %v204_v1 = vld [vmem:[%s488_s2] sm:$0xff]  ;;  %s495_s12 = smov (!%p185_p4, %s414_s12), 1  ;;  %v426_v2 = vmov 0   ;;  %vm216_vm1 = vcmask 130048  }
   0xd   : > { %361 = vmatprep.subr.bf16.mxu0 %v424_v0  ;;  %363 = vmatprep.mubr.msk.bf16.mxu0 %vm425_vm0, %v424_v0  ;;  %s358_s18 = sshll.u32 %s495_s12, 3  ;;  %v201_v4 = vld [vmem:[%s487_s1] sm:$0xf]  ;;  %s353_s24 = sshll.u32 %s495_s12, 2  ;;  %vm267_vm2 = vcmask 519168  }
   0xe   : > { %394 = vset.pattern.permute.xlu0 %v426_v2  ;;  %s192_s21 = scalar_lea.vmem %s486_s0, %s358_s18  ;;  %s199_s27 = scalar_lea.vmem %s489_s3, %s353_s24 }
   0xf   : > { %207 = vperm.xlu0 %394, %v204_v1   ;;  %v395_v3 = vld [vmem:[%s192_s21] sm:$0xff]  }
  0x10   : > { %362 = vmatpush3.bf16.msra.mxu0 %v395_v3 }
  0x13   : > { %364 = vmatmul.mubr.msk.bf16.vlgmr.msra.gmra.mxu0 %vm216_vm1, %v201_v4 }
  0x8a   : > { %v208_v5 = vpop.permute.xlu0 %207 }
  0xd3   : > { %v254_v6 = vpop.f32.mrf.mxu0 }
  0xd4   : > { %v255_v7 = vadd.f32 %v254_v6, %v208_v5 }
  0xd5   : > { %v365_v8 = vpop.f32.mrf.mxu0 }
  0xd6   : > { %v260_v9 = vsub.f32 0.0, %v255_v7 }
  0xd7   : > { %v257_v10 = vpop.f32.mrf.mxu0 }
  0xd8   : > { %v261_v11 = vmul.f32 1.442695, %v260_v9 }
  0xd9   : > { %v366_v12 = vpop.f32.mrf.mxu0 }
  0xda   : > { %396 = vpow2.f32 %v261_v11 }
  0xe7   : > { %v397_v13 = vpop.eup %396 }
  0xe8   : > { %v263_v14 = vadd.f32 1.0, %v397_v13 }
  0xea   : > { %398 = vrcp.f32 %v263_v14 }
  0xf7   : > { %v399_v15 = vpop.eup %398 }
  0xf8   : > { %v265_v16 = vmul.f32 %v399_v15, %v255_v7 }
  0xfa   : > { %v266_v17 = vpack.c.bf16 %v265_v16, %v265_v16 }
  0xfc   : > { %268 = vst.msk [vmem:[%s199_s27] sm:$0xf] %vm267_vm2, %v266_v17 }
  0xfd PF: > { %s13_s14 = sadd.s32 1, %s422_s14   ;;  %s490_s12 = smov %s418_s13 }
  0xfe   : > { %p10_p5 = scmp.ge.s32.totalorder %s13_s14, 4   ;;  %s491_s13 = smov %s493_s15 }
 0x100   :  { %12 = sbr.rel (!%p10_p5) target bundleno = 2 (0x2), region = 62 }

</bundles_post_ra>
